<compile_context>
chip_gen: v7x
topology: tpu7x:2x2x1
jax: 0.10.0
libtpu: 0.0.40
codegen_flags: <defaults>
</compile_context>

<pallas_src>
import numpy as np
import jax
import jax.numpy as jnp
from jax.experimental import pallas as pl
from jax.experimental.pallas import tpu as pltpu

_ALPHA = 0.25
_GAMMA = 2.0   # NOTE: gamma == 2 is hardcoded in-kernel as a squaring.
_EPS = 1e-8


def _round_up(x: int, m: int) -> int:
    return ((x + m - 1) // m) * m


def _make_cost_kernel(class_w: float, bbox_w: float, giou_w: float):
    """Builds the Pallas kernel computing one [tile_q, T_pad] block of the match cost."""

    def kernel(logits_ref, boxes_ref, onehot_ref, tboxes_ref, cost_ref):
        # ---- focal-style classification cost --------------------------------------
        x = logits_ref[...].astype(jnp.float32)                    # [tq, Cp]
        e = jnp.exp(-jnp.abs(x))                                   # exp(-|x|), in (0, 1]
        log1pe = jnp.log(1.0 + e)                                  # stable softplus core
        sp_neg = jnp.maximum(-x, 0.0) + log1pe                     # softplus(-x) = -log(p)
        sp_pos = jnp.maximum(x, 0.0) + log1pe                      # softplus(x)  = -log(1-p)
        r = pl.reciprocal(1.0 + e, approx=True)
        p = jnp.where(x >= 0.0, r, 1.0 - r)                        # sigmoid(x)
        # gamma == 2 hardcoded as squaring
        neg = (1.0 - _ALPHA) * (p * p) * sp_pos
        pos = _ALPHA * ((1.0 - p) * (1.0 - p)) * sp_neg
        # class_cost[q, t] = (pos - neg)[q, target_ids[t]]  == (pos - neg) @ onehot
        class_cost = jnp.dot(pos - neg, onehot_ref[...],
                             preferred_element_type=jnp.float32)   # [tq, Tp]

        # ---- box costs -------------------------------------------------------------
        b = boxes_ref[...].astype(jnp.float32)                     # [tq, 4]  (cx, cy, w, h)
        tb = tboxes_ref[...].astype(jnp.float32)                   # [4, Tp]  (cx, cy, w, h)^T
        cx, cy, w, h = b[:, 0:1], b[:, 1:2], b[:, 2:3], b[:, 3:4]           # [tq, 1]
        tcx, tcy, tw, th = tb[0:1, :], tb[1:2, :], tb[2:3, :], tb[3:4, :]   # [1, Tp]

        # L1 cdist in (cx, cy, w, h) space — matches torch.cdist(out_bbox, target_bbox, p=1)
        bbox_cost = (jnp.abs(cx - tcx) + jnp.abs(cy - tcy) +
                     jnp.abs(w - tw) + jnp.abs(h - th))                     # [tq, Tp]

        # center -> corner format
        x0, x1 = cx - 0.5 * w, cx + 0.5 * w
        y0, y1 = cy - 0.5 * h, cy + 0.5 * h
        tx0, tx1 = tcx - 0.5 * tw, tcx + 0.5 * tw
        ty0, ty1 = tcy - 0.5 * th, tcy + 0.5 * th

        # generalized IoU (pairwise [tq, Tp] via broadcasting)
        # TODO(synk): the torch reference raises on invalid corner boxes; that value
        # check has no in-kernel equivalent and is not replicated here.
        area1 = (x1 - x0) * (y1 - y0)                               # [tq, 1]
        area2 = (tx1 - tx0) * (ty1 - ty0)                           # [1, Tp]
        inter_w = jnp.maximum(jnp.minimum(x1, tx1) - jnp.maximum(x0, tx0), 0.0)
        inter_h = jnp.maximum(jnp.minimum(y1, ty1) - jnp.maximum(y0, ty0), 0.0)
        inter = inter_w * inter_h
        union = area1 + area2 - inter
        iou = inter * pl.reciprocal(union, approx=True)
        enc_w = jnp.maximum(jnp.maximum(x1, tx1) - jnp.minimum(x0, tx0), 0.0)
        enc_h = jnp.maximum(jnp.maximum(y1, ty1) - jnp.minimum(y0, ty0), 0.0)
        enc = enc_w * enc_h
        giou = iou - (enc - union) * pl.reciprocal(enc, approx=True)
        giou_cost = -giou

        cost_ref[...] = bbox_w * bbox_cost + class_w * class_cost + giou_w * giou_cost

    return kernel


def compute_cost_matrix(logits, pred_boxes, targets,
                        class_cost=1.0, bbox_cost=1.0, giou_cost=1.0, tile_q=512):
    """Pallas-computed cost matrix, shape [B, Q, T_pad] float32 (per-batch columns).

    Column t of batch b corresponds to target t of batch b; columns >= len(targets[b])
    are padding (computed against a dummy box) and must be ignored by the caller.
    """
    B, Q, C = logits.shape

    sizes = [int(t["boxes"].shape[0]) for t in targets]
    C_pad = _round_up(C, 128)
    T_pad = _round_up(max(max(sizes), 1), 128)

    # tile_q: multiple of 8, never larger than one padded-Q tile.
    tile_q = max(8, _round_up(min(int(tile_q), _round_up(Q, 8)), 8))
    Q_pad = _round_up(Q, tile_q)
    grid_q = Q_pad // tile_q

    dummy_box = jnp.array([0.5, 0.5, 1.0, 1.0], dtype=jnp.float32)  # valid box -> finite GIoU

    # --- pad predictions: [B, Q_pad, C_pad] and [B, Q_pad, 4] -----------------------
    logits_p = jnp.zeros((B, Q_pad, C_pad), jnp.float32)
    logits_p = logits_p.at[:, :Q, :C].set(logits.astype(jnp.float32))
    boxes_p = jnp.broadcast_to(dummy_box, (B, Q_pad, 4))
    boxes_p = boxes_p.at[:, :Q, :].set(pred_boxes.astype(jnp.float32))

    # --- per-batch targets: onehot [B, C_pad, T_pad], boxes^T [B, 4, T_pad] ----------
    onehot_list, tbox_list = [], []
    for t in targets:
        ids = jnp.asarray(t["class_labels"], dtype=jnp.int32)
        bx = jnp.asarray(t["boxes"], dtype=jnp.float32).reshape(-1, 4)
        sz = int(ids.shape[0])
        oh = jax.nn.one_hot(ids, C_pad, dtype=jnp.float32).T            # [C_pad, sz]
        oh = jnp.pad(oh, ((0, 0), (0, T_pad - sz)))                     # zero cols for padding
        pad_boxes = jnp.broadcast_to(dummy_box, (T_pad - sz, 4))
        tb = jnp.concatenate([bx, pad_boxes], axis=0).T                 # [4, T_pad]
        onehot_list.append(oh)
        tbox_list.append(tb)
    onehot = jnp.stack(onehot_list, axis=0)                             # [B, C_pad, T_pad]
    tboxes = jnp.stack(tbox_list, axis=0)                               # [B, 4, T_pad]

    # --- VMEM budget (double-buffered inputs + output); keep below v7x's 64 MiB ------
    block_bytes = 4 * (2 * (tile_q * C_pad + tile_q * 4 + C_pad * T_pad + 4 * T_pad)
                       + 2 * tile_q * T_pad)
    vmem_limit = int(min(max(2 * block_bytes, 32 * 1024 * 1024), 60 * 1024 * 1024))

    cost_estimate = pl.CostEstimate(
        flops=int(2 * B * Q_pad * C_pad * T_pad + B * Q_pad * (8 * C_pad + 40 * T_pad)),
        transcendentals=int(B * Q_pad * (3 * C_pad + 2 * T_pad)),
        bytes_accessed=int(4 * (B * Q_pad * C_pad + B * Q_pad * 4 + B * C_pad * T_pad
                                + B * 4 * T_pad + B * Q_pad * T_pad)),
    )

    cost = pl.pallas_call(
        _make_cost_kernel(float(class_cost), float(bbox_cost), float(giou_cost)),
        out_shape=jax.ShapeDtypeStruct((B, Q_pad, T_pad), jnp.float32),
        grid=(B, grid_q),
        in_specs=[
            pl.BlockSpec((None, tile_q, C_pad), lambda b, qi: (b, qi, 0)),
            pl.BlockSpec((None, tile_q, 4), lambda b, qi: (b, qi, 0)),
            pl.BlockSpec((None, C_pad, T_pad), lambda b, qi: (b, 0, 0)),
            pl.BlockSpec((None, 4, T_pad), lambda b, qi: (b, 0, 0)),
        ],
        out_specs=pl.BlockSpec((None, tile_q, T_pad), lambda b, qi: (b, qi, 0)),
        compiler_params=pltpu.CompilerParams(
            dimension_semantics=("parallel", "parallel"),
            vmem_limit_bytes=vmem_limit,
        ),
        cost_estimate=cost_estimate,
    )(logits_p, boxes_p, onehot, tboxes)

    return cost[:, :Q, :]  # [B, Q, T_pad]; caller slices per-batch valid columns


def _reference_cost_matrix(logits, pred_boxes, target_ids, target_boxes,
                           class_cost=1.0, bbox_cost=1.0, giou_cost=1.0):
    """Pure-JAX reference mirroring the torch forward (for correctness checking)."""
    B, Q, C = logits.shape
    out_prob = jax.nn.sigmoid(logits.reshape(-1, C).astype(jnp.float32))
    out_bbox = pred_boxes.reshape(-1, 4).astype(jnp.float32)
    tgt_bbox = target_boxes.astype(jnp.float32)

    neg = (1 - _ALPHA) * out_prob ** _GAMMA * (-jnp.log(1 - out_prob + _EPS))
    pos = _ALPHA * (1 - out_prob) ** _GAMMA * (-jnp.log(out_prob + _EPS))
    cls = pos[:, target_ids] - neg[:, target_ids]

    bbox = jnp.sum(jnp.abs(out_bbox[:, None, :] - tgt_bbox[None, :, :]), axis=-1)

    def c2c(b):
        cx, cy, w, h = b[:, 0], b[:, 1], b[:, 2], b[:, 3]
        return jnp.stack([cx - 0.5 * w, cy - 0.5 * h, cx + 0.5 * w, cy + 0.5 * h], axis=-1)

    b1, b2 = c2c(out_bbox), c2c(tgt_bbox)
    a1 = (b1[:, 2] - b1[:, 0]) * (b1[:, 3] - b1[:, 1])
    a2 = (b2[:, 2] - b2[:, 0]) * (b2[:, 3] - b2[:, 1])
    lt = jnp.maximum(b1[:, None, :2], b2[None, :, :2])
    rb = jnp.minimum(b1[:, None, 2:], b2[None, :, 2:])
    wh = jnp.clip(rb - lt, 0)
    inter = wh[..., 0] * wh[..., 1]
    union = a1[:, None] + a2[None, :] - inter
    iou = inter / union
    tl = jnp.minimum(b1[:, None, :2], b2[None, :, :2])
    br = jnp.maximum(b1[:, None, 2:], b2[None, :, 2:])
    ewh = jnp.clip(br - tl, 0)
    enc = ewh[..., 0] * ewh[..., 1]
    giou = iou - (enc - union) / enc

    cm = bbox_cost * bbox + class_cost * cls + giou_cost * (-giou)
    return cm.reshape(B, Q, -1)


def _linear_sum_assignment(cost_np):
    """scipy Hungarian; tiny brute-force fallback for small problems."""
    try:
        from scipy.optimize import linear_sum_assignment
        return linear_sum_assignment(cost_np)
    except Exception:
        import itertools
        n_rows, n_cols = cost_np.shape
        best_perm, best_val = None, None
        for perm in itertools.permutations(range(n_rows), n_cols):
            val = sum(cost_np[perm[j], j] for j in range(n_cols))
            if best_val is None or val < best_val:
                best_val, best_perm = val, perm
        pairs = sorted(zip(best_perm, range(n_cols)))
        rows = np.array([p[0] for p in pairs], dtype=np.int64)
        cols = np.array([p[1] for p in pairs], dtype=np.int64)
        return rows, cols


def conditional_detr_hungarian_matcher(outputs, targets,
                                       class_cost=1.0, bbox_cost=1.0, giou_cost=1.0):
    """Forward pass of ConditionalDetrHungarianMatcher.

    outputs: dict with 'logits' [B, Q, C] and 'pred_boxes' [B, Q, 4] (cxcywh).
    targets: list of dicts with 'class_labels' [n_i] and 'boxes' [n_i, 4].
    Returns (indices, cost) where indices is a list of (index_i, index_j) int64 numpy
    arrays per batch element and cost is the [B, Q, T_pad] Pallas cost matrix.
    """
    logits, pred_boxes = outputs["logits"], outputs["pred_boxes"]
    sizes = [int(t["boxes"].shape[0]) for t in targets]

    cost = compute_cost_matrix(logits, pred_boxes, targets,
                               class_cost, bbox_cost, giou_cost)
    cost_np = np.asarray(jax.block_until_ready(cost))  # [B, Q, T_pad]

    indices = []
    for b, sz in enumerate(sizes):
        c = cost_np[b, :, :sz]                          # padding columns are never read
        i, j = _linear_sum_assignment(c)
        indices.append((np.asarray(i, dtype=np.int64), np.asarray(j, dtype=np.int64)))
    return indices, cost


if __name__ == "__main__":
    key = jax.random.PRNGKey(0)
    B, Q, C = 2, 8, 8            # batch, num_queries, num_classes
    sizes = [3, 5]               # targets per batch element

    k1, k2, k3, k4 = jax.random.split(key, 4)
    logits = jax.random.normal(k1, (B, Q, C), dtype=jnp.float32)
    # predicted boxes in normalized cxcywh with positive w/h
    pred_boxes = jax.random.uniform(k2, (B, Q, 4), minval=0.1, maxval=0.6,
                                    dtype=jnp.float32)

    targets = []
    tk = k3
    for b, sz in enumerate(sizes):
        tk, ka, kb = jax.random.split(tk, 3)
        labels = jax.random.randint(ka, (sz,), 0, C, dtype=jnp.int32)
        boxes = jax.random.uniform(kb, (sz, 4), minval=0.1, maxval=0.6,
                                   dtype=jnp.float32)
        targets.append({"class_labels": labels, "boxes": boxes})

    outputs = {"logits": logits, "pred_boxes": pred_boxes}

    indices, cost = conditional_detr_hungarian_matcher(outputs, targets)
    jax.block_until_ready(cost)

    # correctness check of the Pallas cost matrix vs. pure-JAX (torch-mirror) reference;
    # per-batch columns only (kernel never computes cross-batch columns).
    # Tolerance covers pl.reciprocal(approx=True) and the softplus-vs-eps-log reformulation.
    target_ids = jnp.concatenate([t["class_labels"] for t in targets])
    target_boxes = jnp.concatenate([t["boxes"] for t in targets])
    ref = np.asarray(_reference_cost_matrix(logits, pred_boxes, target_ids, target_boxes))
    got = np.asarray(cost)
    offset = 0
    for b, sz in enumerate(sizes):
        np.testing.assert_allclose(got[b, :, :sz], ref[b, :, offset:offset + sz],
                                   rtol=1e-2, atol=1e-2)
        offset += sz

    # matched indices have the right lengths
    for (i, j), sz in zip(indices, sizes):
        assert len(i) == len(j) == min(Q, sz)
        assert i.dtype == np.int64 and j.dtype == np.int64

    print("KERNEL_OK")
</pallas_src>

<mosaic_0001>
module attributes {stable_mosaic.version = 11 : i64} {
  func.func @kernel(%arg0: i32, %arg1: i32, %arg2: memref<1x8x128xf32, #tpu.memory_space<vmem>>, %arg3: memref<1x8x4xf32, #tpu.memory_space<vmem>>, %arg4: memref<1x128x128xf32, #tpu.memory_space<vmem>>, %arg5: memref<1x4x128xf32, #tpu.memory_space<vmem>>, %arg6: memref<1x8x128xf32, #tpu.memory_space<vmem>>) attributes {dimension_semantics = [#tpu.dimension_semantics<parallel>, #tpu.dimension_semantics<parallel>], iteration_bounds = array<i64: 2, 1>, scalar_prefetch = 0 : i64, scratch_operands = 0 : i64, tpu.core_type = #tpu.core_type<tc>, window_params = [{transform_indices = @transform_0, window_bounds = array<i64: 1, 8, 128>}, {transform_indices = @transform_1, window_bounds = array<i64: 1, 8, 4>}, {transform_indices = @transform_2, window_bounds = array<i64: 1, 128, 128>}, {transform_indices = @transform_3, window_bounds = array<i64: 1, 4, 128>}, {transform_indices = @transform_4, window_bounds = array<i64: 1, 8, 128>}]} {
    %c0 = arith.constant 0 : index
    %c0_0 = arith.constant 0 : index
    %c0_1 = arith.constant 0 : index
    %0 = vector.load %arg2[%c0, %c0_0, %c0_1] : memref<1x8x128xf32, #tpu.memory_space<vmem>>, vector<1x8x128xf32>
    %1 = vector.shape_cast %0 : vector<1x8x128xf32> to vector<8x128xf32>
    %2 = math.absf %1 : vector<8x128xf32>
    %cst = arith.constant 0.000000e+00 : f32
    %3 = vector.broadcast %cst : f32 to vector<8x128xf32>
    %4 = arith.subf %3, %2 : vector<8x128xf32>
    %5 = math.exp %4 : vector<8x128xf32>
    %cst_2 = arith.constant 1.000000e+00 : f32
    %6 = vector.broadcast %cst_2 : f32 to vector<8x128xf32>
    %7 = arith.addf %6, %5 : vector<8x128xf32>
    %8 = math.log %7 : vector<8x128xf32>
    %cst_3 = arith.constant 0.000000e+00 : f32
    %9 = vector.broadcast %cst_3 : f32 to vector<8x128xf32>
    %10 = arith.subf %9, %1 : vector<8x128xf32>
    %cst_4 = arith.constant 0.000000e+00 : f32
    %11 = vector.broadcast %cst_4 : f32 to vector<8x128xf32>
    %12 = arith.maximumf %10, %11 : vector<8x128xf32>
    %13 = arith.addf %12, %8 : vector<8x128xf32>
    %cst_5 = arith.constant 0.000000e+00 : f32
    %14 = vector.broadcast %cst_5 : f32 to vector<8x128xf32>
    %15 = arith.maximumf %1, %14 : vector<8x128xf32>
    %16 = arith.addf %15, %8 : vector<8x128xf32>
    %cst_6 = arith.constant 1.000000e+00 : f32
    %17 = vector.broadcast %cst_6 : f32 to vector<8x128xf32>
    %18 = arith.addf %17, %5 : vector<8x128xf32>
    %19 = tpu.reciprocal %18 {approx = true} : vector<8x128xf32> -> vector<8x128xf32>
    %cst_7 = arith.constant 0.000000e+00 : f32
    %20 = vector.broadcast %cst_7 : f32 to vector<8x128xf32>
    %21 = arith.cmpf oge, %1, %20 : vector<8x128xf32>
    %cst_8 = arith.constant 1.000000e+00 : f32
    %22 = vector.broadcast %cst_8 : f32 to vector<8x128xf32>
    %23 = arith.subf %22, %19 : vector<8x128xf32>
    %24 = arith.select %21, %19, %23 : vector<8x128xi1>, vector<8x128xf32>
    %25 = arith.mulf %24, %24 : vector<8x128xf32>
    %cst_9 = arith.constant 7.500000e-01 : f32
    %26 = vector.broadcast %cst_9 : f32 to vector<8x128xf32>
    %27 = arith.mulf %26, %25 : vector<8x128xf32>
    %28 = arith.mulf %27, %16 : vector<8x128xf32>
    %cst_10 = arith.constant 1.000000e+00 : f32
    %29 = vector.broadcast %cst_10 : f32 to vector<8x128xf32>
    %30 = arith.subf %29, %24 : vector<8x128xf32>
    %cst_11 = arith.constant 1.000000e+00 : f32
    %31 = vector.broadcast %cst_11 : f32 to vector<8x128xf32>
    %32 = arith.subf %31, %24 : vector<8x128xf32>
    %33 = arith.mulf %30, %32 : vector<8x128xf32>
    %cst_12 = arith.constant 2.500000e-01 : f32
    %34 = vector.broadcast %cst_12 : f32 to vector<8x128xf32>
    %35 = arith.mulf %34, %33 : vector<8x128xf32>
    %36 = arith.mulf %35, %13 : vector<8x128xf32>
    %37 = arith.subf %36, %28 : vector<8x128xf32>
    %c0_13 = arith.constant 0 : index
    %c0_14 = arith.constant 0 : index
    %c0_15 = arith.constant 0 : index
    %38 = vector.load %arg4[%c0_13, %c0_14, %c0_15] : memref<1x128x128xf32, #tpu.memory_space<vmem>>, vector<1x128x128xf32>
    %39 = vector.shape_cast %38 : vector<1x128x128xf32> to vector<128x128xf32>
    %cst_16 = arith.constant dense<0.000000e+00> : vector<8x128xf32>
    %40 = tpu.matmul %37, %39, %cst_16 {dimension_numbers = #tpu.dot_dimension_numbers<[1], [0], [0], [1], [0, 0, 1, 1], [], []>} : vector<8x128xf32>, vector<128x128xf32>, vector<8x128xf32> -> vector<8x128xf32>
    %c0_17 = arith.constant 0 : index
    %c0_18 = arith.constant 0 : index
    %c0_19 = arith.constant 0 : index
    %41 = vector.load %arg3[%c0_17, %c0_18, %c0_19] : memref<1x8x4xf32, #tpu.memory_space<vmem>>, vector<1x8x4xf32>
    %42 = vector.shape_cast %41 : vector<1x8x4xf32> to vector<8x4xf32>
    %c0_20 = arith.constant 0 : index
    %c0_21 = arith.constant 0 : index
    %c0_22 = arith.constant 0 : index
    %43 = vector.load %arg5[%c0_20, %c0_21, %c0_22] : memref<1x4x128xf32, #tpu.memory_space<vmem>>, vector<1x4x128xf32>
    %44 = vector.shape_cast %43 : vector<1x4x128xf32> to vector<4x128xf32>
    %45 = vector.extract_strided_slice %42 {offsets = [0, 0], sizes = [8, 1], strides = [1, 1]} : vector<8x4xf32> to vector<8x1xf32>
    %46 = vector.extract_strided_slice %42 {offsets = [0, 1], sizes = [8, 1], strides = [1, 1]} : vector<8x4xf32> to vector<8x1xf32>
    %47 = vector.extract_strided_slice %42 {offsets = [0, 2], sizes = [8, 1], strides = [1, 1]} : vector<8x4xf32> to vector<8x1xf32>
    %48 = vector.extract_strided_slice %42 {offsets = [0, 3], sizes = [8, 1], strides = [1, 1]} : vector<8x4xf32> to vector<8x1xf32>
    %49 = vector.extract_strided_slice %44 {offsets = [0, 0], sizes = [1, 128], strides = [1, 1]} : vector<4x128xf32> to vector<1x128xf32>
    %50 = vector.extract_strided_slice %44 {offsets = [1, 0], sizes = [1, 128], strides = [1, 1]} : vector<4x128xf32> to vector<1x128xf32>
    %51 = vector.extract_strided_slice %44 {offsets = [2, 0], sizes = [1, 128], strides = [1, 1]} : vector<4x128xf32> to vector<1x128xf32>
    %52 = vector.extract_strided_slice %44 {offsets = [3, 0], sizes = [1, 128], strides = [1, 1]} : vector<4x128xf32> to vector<1x128xf32>
    %53 = vector.broadcast %45 : vector<8x1xf32> to vector<8x128xf32>
    %54 = vector.broadcast %49 : vector<1x128xf32> to vector<8x128xf32>
    %55 = arith.subf %53, %54 : vector<8x128xf32>
    %56 = math.absf %55 : vector<8x128xf32>
    %57 = vector.broadcast %46 : vector<8x1xf32> to vector<8x128xf32>
    %58 = vector.broadcast %50 : vector<1x128xf32> to vector<8x128xf32>
    %59 = arith.subf %57, %58 : vector<8x128xf32>
    %60 = math.absf %59 : vector<8x128xf32>
    %61 = arith.addf %56, %60 : vector<8x128xf32>
    %62 = vector.broadcast %47 : vector<8x1xf32> to vector<8x128xf32>
    %63 = vector.broadcast %51 : vector<1x128xf32> to vector<8x128xf32>
    %64 = arith.subf %62, %63 : vector<8x128xf32>
    %65 = math.absf %64 : vector<8x128xf32>
    %66 = arith.addf %61, %65 : vector<8x128xf32>
    %67 = vector.broadcast %48 : vector<8x1xf32> to vector<8x128xf32>
    %68 = vector.broadcast %52 : vector<1x128xf32> to vector<8x128xf32>
    %69 = arith.subf %67, %68 : vector<8x128xf32>
    %70 = math.absf %69 : vector<8x128xf32>
    %71 = arith.addf %66, %70 : vector<8x128xf32>
    %cst_23 = arith.constant 5.000000e-01 : f32
    %72 = vector.broadcast %cst_23 : f32 to vector<8x1xf32>
    %73 = arith.mulf %72, %47 : vector<8x1xf32>
    %74 = arith.subf %45, %73 : vector<8x1xf32>
    %cst_24 = arith.constant 5.000000e-01 : f32
    %75 = vector.broadcast %cst_24 : f32 to vector<8x1xf32>
    %76 = arith.mulf %75, %47 : vector<8x1xf32>
    %77 = arith.addf %45, %76 : vector<8x1xf32>
    %cst_25 = arith.constant 5.000000e-01 : f32
    %78 = vector.broadcast %cst_25 : f32 to vector<8x1xf32>
    %79 = arith.mulf %78, %48 : vector<8x1xf32>
    %80 = arith.subf %46, %79 : vector<8x1xf32>
    %cst_26 = arith.constant 5.000000e-01 : f32
    %81 = vector.broadcast %cst_26 : f32 to vector<8x1xf32>
    %82 = arith.mulf %81, %48 : vector<8x1xf32>
    %83 = arith.addf %46, %82 : vector<8x1xf32>
    %cst_27 = arith.constant 5.000000e-01 : f32
    %84 = vector.broadcast %cst_27 : f32 to vector<1x128xf32>
    %85 = arith.mulf %84, %51 : vector<1x128xf32>
    %86 = arith.subf %49, %85 : vector<1x128xf32>
    %cst_28 = arith.constant 5.000000e-01 : f32
    %87 = vector.broadcast %cst_28 : f32 to vector<1x128xf32>
    %88 = arith.mulf %87, %51 : vector<1x128xf32>
    %89 = arith.addf %49, %88 : vector<1x128xf32>
    %cst_29 = arith.constant 5.000000e-01 : f32
    %90 = vector.broadcast %cst_29 : f32 to vector<1x128xf32>
    %91 = arith.mulf %90, %52 : vector<1x128xf32>
    %92 = arith.subf %50, %91 : vector<1x128xf32>
    %cst_30 = arith.constant 5.000000e-01 : f32
    %93 = vector.broadcast %cst_30 : f32 to vector<1x128xf32>
    %94 = arith.mulf %93, %52 : vector<1x128xf32>
    %95 = arith.addf %50, %94 : vector<1x128xf32>
    %96 = arith.subf %77, %74 : vector<8x1xf32>
    %97 = arith.subf %83, %80 : vector<8x1xf32>
    %98 = arith.mulf %96, %97 : vector<8x1xf32>
    %99 = arith.subf %89, %86 : vector<1x128xf32>
    %100 = arith.subf %95, %92 : vector<1x128xf32>
    %101 = arith.mulf %99, %100 : vector<1x128xf32>
    %102 = vector.broadcast %77 : vector<8x1xf32> to vector<8x128xf32>
    %103 = vector.broadcast %89 : vector<1x128xf32> to vector<8x128xf32>
    %104 = arith.minimumf %102, %103 : vector<8x128xf32>
    %105 = vector.broadcast %74 : vector<8x1xf32> to vector<8x128xf32>
    %106 = vector.broadcast %86 : vector<1x128xf32> to vector<8x128xf32>
    %107 = arith.maximumf %105, %106 : vector<8x128xf32>
    %108 = arith.subf %104, %107 : vector<8x128xf32>
    %cst_31 = arith.constant 0.000000e+00 : f32
    %109 = vector.broadcast %cst_31 : f32 to vector<8x128xf32>
    %110 = arith.maximumf %108, %109 : vector<8x128xf32>
    %111 = vector.broadcast %83 : vector<8x1xf32> to vector<8x128xf32>
    %112 = vector.broadcast %95 : vector<1x128xf32> to vector<8x128xf32>
    %113 = arith.minimumf %111, %112 : vector<8x128xf32>
    %114 = vector.broadcast %80 : vector<8x1xf32> to vector<8x128xf32>
    %115 = vector.broadcast %92 : vector<1x128xf32> to vector<8x128xf32>
    %116 = arith.maximumf %114, %115 : vector<8x128xf32>
    %117 = arith.subf %113, %116 : vector<8x128xf32>
    %cst_32 = arith.constant 0.000000e+00 : f32
    %118 = vector.broadcast %cst_32 : f32 to vector<8x128xf32>
    %119 = arith.maximumf %117, %118 : vector<8x128xf32>
    %120 = arith.mulf %110, %119 : vector<8x128xf32>
    %121 = vector.broadcast %98 : vector<8x1xf32> to vector<8x128xf32>
    %122 = vector.broadcast %101 : vector<1x128xf32> to vector<8x128xf32>
    %123 = arith.addf %121, %122 : vector<8x128xf32>
    %124 = arith.subf %123, %120 : vector<8x128xf32>
    %125 = tpu.reciprocal %124 {approx = true} : vector<8x128xf32> -> vector<8x128xf32>
    %126 = arith.mulf %120, %125 : vector<8x128xf32>
    %127 = vector.broadcast %77 : vector<8x1xf32> to vector<8x128xf32>
    %128 = vector.broadcast %89 : vector<1x128xf32> to vector<8x128xf32>
    %129 = arith.maximumf %127, %128 : vector<8x128xf32>
    %130 = vector.broadcast %74 : vector<8x1xf32> to vector<8x128xf32>
    %131 = vector.broadcast %86 : vector<1x128xf32> to vector<8x128xf32>
    %132 = arith.minimumf %130, %131 : vector<8x128xf32>
    %133 = arith.subf %129, %132 : vector<8x128xf32>
    %cst_33 = arith.constant 0.000000e+00 : f32
    %134 = vector.broadcast %cst_33 : f32 to vector<8x128xf32>
    %135 = arith.maximumf %133, %134 : vector<8x128xf32>
    %136 = vector.broadcast %83 : vector<8x1xf32> to vector<8x128xf32>
    %137 = vector.broadcast %95 : vector<1x128xf32> to vector<8x128xf32>
    %138 = arith.maximumf %136, %137 : vector<8x128xf32>
    %139 = vector.broadcast %80 : vector<8x1xf32> to vector<8x128xf32>
    %140 = vector.broadcast %92 : vector<1x128xf32> to vector<8x128xf32>
    %141 = arith.minimumf %139, %140 : vector<8x128xf32>
    %142 = arith.subf %138, %141 : vector<8x128xf32>
    %cst_34 = arith.constant 0.000000e+00 : f32
    %143 = vector.broadcast %cst_34 : f32 to vector<8x128xf32>
    %144 = arith.maximumf %142, %143 : vector<8x128xf32>
    %145 = arith.mulf %135, %144 : vector<8x128xf32>
    %146 = arith.subf %145, %124 : vector<8x128xf32>
    %147 = tpu.reciprocal %145 {approx = true} : vector<8x128xf32> -> vector<8x128xf32>
    %148 = arith.mulf %146, %147 : vector<8x128xf32>
    %149 = arith.subf %126, %148 : vector<8x128xf32>
    %cst_35 = arith.constant 0.000000e+00 : f32
    %150 = vector.broadcast %cst_35 : f32 to vector<8x128xf32>
    %151 = arith.subf %150, %149 : vector<8x128xf32>
    %cst_36 = arith.constant 1.000000e+00 : f32
    %152 = vector.broadcast %cst_36 : f32 to vector<8x128xf32>
    %153 = arith.mulf %152, %71 : vector<8x128xf32>
    %cst_37 = arith.constant 1.000000e+00 : f32
    %154 = vector.broadcast %cst_37 : f32 to vector<8x128xf32>
    %155 = arith.mulf %154, %40 : vector<8x128xf32>
    %156 = arith.addf %153, %155 : vector<8x128xf32>
    %cst_38 = arith.constant 1.000000e+00 : f32
    %157 = vector.broadcast %cst_38 : f32 to vector<8x128xf32>
    %158 = arith.mulf %157, %151 : vector<8x128xf32>
    %159 = arith.addf %156, %158 : vector<8x128xf32>
    %c0_39 = arith.constant 0 : index
    %c0_40 = arith.constant 0 : index
    %c0_41 = arith.constant 0 : index
    %160 = vector.load %arg6[%c0_39, %c0_40, %c0_41] : memref<1x8x128xf32, #tpu.memory_space<vmem>>, vector<1x8x128xf32>
    %161 = vector.shape_cast %160 : vector<1x8x128xf32> to vector<8x128xf32>
    %162 = vector.shape_cast %159 : vector<8x128xf32> to vector<1x8x128xf32>
    tpu.vector_store %arg6[%c0_39, %c0_40, %c0_41], %162 {strides = array<i32>} : memref<1x8x128xf32, #tpu.memory_space<vmem>>, vector<1x8x128xf32>,
    return
  }
  func.func @transform_0(%arg0: i32, %arg1: i32) -> (i32, i32, i32) {
    %c0_i32 = arith.constant 0 : i32
    %c0_i32_0 = arith.constant 0 : i32
    return %arg0, %arg1, %c0_i32 : i32, i32, i32
  }
  func.func @transform_1(%arg0: i32, %arg1: i32) -> (i32, i32, i32) {
    %c0_i32 = arith.constant 0 : i32
    %c0_i32_0 = arith.constant 0 : i32
    return %arg0, %arg1, %c0_i32 : i32, i32, i32
  }
  func.func @transform_2(%arg0: i32, %arg1: i32) -> (i32, i32, i32) {
    %c0_i32 = arith.constant 0 : i32
    %c0_i32_0 = arith.constant 0 : i32
    %c0_i32_1 = arith.constant 0 : i32
    return %arg0, %c0_i32, %c0_i32_0 : i32, i32, i32
  }
  func.func @transform_3(%arg0: i32, %arg1: i32) -> (i32, i32, i32) {
    %c0_i32 = arith.constant 0 : i32
    %c0_i32_0 = arith.constant 0 : i32
    %c0_i32_1 = arith.constant 0 : i32
    return %arg0, %c0_i32, %c0_i32_0 : i32, i32, i32
  }
  func.func @transform_4(%arg0: i32, %arg1: i32) -> (i32, i32, i32) {
    %c0_i32 = arith.constant 0 : i32
    %c0_i32_0 = arith.constant 0 : i32
    return %arg0, %arg1, %c0_i32 : i32, i32, i32
  }
}

</mosaic_0001>

<bundles_post_ra>
// kernel: tpu_custom_call.1
= control target key start
LH: loop header
LB: loop body
LE: loop exit
PB: predicated region body
PF: predicated region fallthrough
CT: control target
= control target key end

     0   :  { %9 = vsyncpa [#allocation3], 0  ;;  %s1257_s0 = inlined_call_operand.vmem [shape: f32[2,8,128], index: 0, kind: input, shape index: {}]   ;;  %s1258_s1 = inlined_call_operand.vmem [shape: f32[2,8,4], index: 1, kind: input, shape index: {}]   ;;  %s1259_s2 = inlined_call_operand.hbm [shape: f32[2,128,128], index: 2, kind: input, shape index: {}]   ;;  %s1260_s3 = inlined_call_operand.vmem [shape: f32[2,4,128], index: 3, kind: input, shape index: {}]   ;;  %s1261_s4 = inlined_call_operand.hbm [shape: f32[2,8,128], index: 4, kind: output, shape index: {}]  }
   0x1   :  { %11 = vsyncpa [#allocation3 + $0x1], 0 }
   0x2   :  { %12 = vsyncpa [#allocation4], 0 }
   0x3   :  { %14 = vsyncpa [#allocation4 + $0x1], 0  ;;  %s1031_s15 = smov 0   ;;  %s1033_s16 = smov 0  }
   0x4   :  { %s1035_s17 = smov 0   ;;  %s1037_s18 = smov 0  }
   0x5   :  { %s1039_s19 = smov 0   ;;  %s1041_s20 = smov 0  }
   0x6 LB: > { %s693_s21 = sadd.s32 4294967295, %s991_s20   ;;  %s694_s22 = sadd.s32 4294967294, %s991_s20   ;;  %s991_s20 = sphi %s1041_s20, %s20_s20   ;;  %s987_s19 = sphi %s1039_s19, %s1276_s19   ;;  %s983_s18 = sphi %s1037_s18, %s1275_s18   ;;  %s979_s17 = sphi %s1035_s17, %s1274_s17   ;;  %s975_s16 = sphi %s1033_s16, %s1273_s16   ;;  %s971_s15 = sphi %s1031_s15, %s1272_s15  }
   0x7   : > { %s32_s23 = sadd.s32 1, %s987_s19  ;;  %s95_s24 = sadd.s32 1, %s979_s17 }
   0x8   : > { %p34_p0 = scmp.ge.s32.totalorder %s32_s23, 2  ;;  %p102_p1 = scmp.ne.s32.totalorder %s979_s17, %s975_s16 }
   0x9   : > { %p103_p2 = scmp.eq.s32.totalorder %s991_s20, 0  ;;  %p108_p3 = scmp.ne.s32.totalorder %s975_s16, %s971_s15 }
   0xa   : > { %s1278_s23 = smov (%p34_p0, %s32_s23), 0  ;;  %p109_p5 = scmp.eq.s32.totalorder %s693_s21, 0 }
   0xb   : > { %p1072_p4 = por %p103_p2, %p102_p1  ;;  %s92_s26 = ssub.s32 %s987_s19, %s1278_s23 }
   0xc   : > { %p160_p6 = scmp.eq.s32.totalorder %s693_s21, 1  ;;  %p93_p7 = scmp.eq.s32.totalorder %s92_s26, 0 }
   0xd   : > { %p1078_p8 = por %p109_p5, %p108_p3  ;;  %p166_p10 = scmp.eq.s32.totalorder %s694_s22, 1 }
   0xe   : > { %p1082_p9 = por %p160_p6, %p102_p1  ;;  %p799_p13 = scmp.lt.s32.totalorder %s991_s20, 2 }
   0xf   : > { %s1087_s29 = scalar_select %p93_p7, %s979_s17, %s95_s24  }
  0x10   : > { %s1265_s28 = scalar_select %p1082_p9, 1, 0 }
  0x11   : > { %p1089_p11 = por %p166_p10, %p108_p3  ;;  %s206_s5 = sand.u32 1, %s979_s17  }
  0x12   : > { %s697_s6 = sshll.u32 %s206_s5, 7  ;;  %s710_s7 = sshll.u32 %s987_s19, 11 }
  0x13   : > { %s1266_s30 = scalar_select %p1089_p11, 1, 0 }
  0x14   : > { %s1100_s10 = scalar_lea.hbm %s1259_s2, %s710_s7  ;;  %s210_s11 = scalar_lea.vmem [#allocation2], %s697_s6 }
  0x15   : > { %s217_s12 = sshll.u32 %s210_s11, 4  ;;  %p1106_p0 = pnand %p799_p13, %p1072_p4  ;;  %s1102_s12 = int_to_ptr.vmem [resolvable:$true] %s217_s12 }
  0x16   : > { %s1111_s14 = scalar_lea.sflag [#allocation3], %s206_s5  ;;  %s879_s21 = scalar_lea.hbm %s1100_s10, 2048 }
  0x17   : > { %p880_p2 = scmp.ne.s32.totalorder %s1100_s10, %s879_s21  ;;  %p881_p3 = pneg %p1106_p0 }
  0x18   : > { %s884_s25 = scalar_lea.hbm %s1259_s2, 4096  ;;  %p885_p4 = scmp.lt.u32.totalorder %s1100_s10, %s1259_s2 }
  0x19   : > { %p882_p5 = pnand %p881_p3, %p880_p2  ;;  %p886_p7 = scmp.lt.u32.totalorder %s884_s25, %s879_s21 }
  0x1a   : > { %p888_p13 = scmp.lt.u32.totalorder %s879_s21, %s1100_s10 }
  0x1b   : > { %p883_p6 = pneg %p882_p5  ;;  %p887_p10 = por %p886_p7, %p885_p4 }
  0x1d   : > { %p889_p12 = por %p888_p13, %p887_p10 }
  0x1f   : > { %p890_p1 = pnand %p889_p12, %p883_p6 }
  0x21   : > { %893 = shalt.err (!%p890_p1)
}
  0x22   : > { %s894_s5 = scalar_lea.vmem %s1102_s12, 2048  ;;  %s993_s7 = smov [#allocation2]  }
  0x23   : > { %p895_p2 = scmp.ne.s32.totalorder %s1102_s12, %s894_s5  ;;  %s899_s8 = sshll.u32 %s993_s7, 4  ;;  %s900_s8 = int_to_ptr.vmem [resolvable:$false] %s899_s8 }
  0x24   : > { %s901_s9 = scalar_lea.vmem %s900_s8, 4096  ;;  %p902_p9 = scmp.lt.s32.totalorder %s1102_s12, %s900_s8 }
  0x25   : > { %p897_p5 = pnand %p895_p2, %p881_p3  ;;  %p903_p4 = scmp.lt.s32.totalorder %s901_s9, %s894_s5 }
  0x27   : > { %p898_p11 = pneg %p897_p5  ;;  %p904_p7 = por %p903_p4, %p902_p9 }
  0x29   : > { %p905_p10 = pnand %p904_p7, %p898_p11 }
  0x2b   : > { %908 = shalt.err (!%p905_p10)
}
  0x2c   : > { %s994_s11 = smov 128   ;;  %s995_s21 = smov 8  }
  0x2d   : > { %794 = dma.hbm_to_vmem [thread:$0]  (!%p1106_p0), %s1100_s10, 2048, %s1102_s12, %s1111_s14, %s994_s11, %s994_s11, %s995_s21  }
  0x2e   : > { %p232_p12 = scmp.lt.s32.totalorder %s991_s20, 3  ;;  %p1268_p1 = scmp.ge.s32.totalorder %s991_s20, 1 }
  0x30   : > { %p233_p3 = pnand %p1268_p1, %p232_p12 }
  0x31   : > { %s1143_s22 = sand.u32 (!%p233_p3), 1, %s975_s16  }
  0x32   : > { %236 = sbr.rel (%p233_p3) target bundleno = 468 (0x1d4), region = 36  ;;  %s701_s24 = sshll.u32 (!%p233_p3), %s1143_s22, 7 }
  0x33   : > { %s239_s25 = scalar_lea.sflag (!%p233_p3), [#allocation3], %s1143_s22  ;;  %s1147_s26 = scalar_lea.vmem (!%p233_p3), [#allocation2], %s701_s24 }
  0x39   : > { %962 = dma.done.wait (%p1078_p8), %s239_s25, 2048  }
  0x3a   : > { %964 = vsyncadd (%p1078_p8), %s239_s25, 4294965248  ;;  %p285_p9 = scmp.lt.s32.totalorder %s983_s18, 1  ;;  %v996_v0 = vmov 0   ;;  %v997_v1 = vmov 1   ;;  %v328_v4 = vld [vmem:[%s1147_s26] sm:$0xff]  ;;  %v329_v5 = vld [vmem:[%s1147_s26 + $0x8] sm:$0xff] }
  0x3b   : > { %860 = vset.pattern.permute.xlu1 %v996_v0  ;;  %861 = vset.pattern.permute.xlu0 %v997_v1  ;;  %v330_v6 = vld [vmem:[%s1147_s26 + $0x10] sm:$0xff]  ;;  %v998_v7 = vmov 0.0|0.0   ;;  %v764_v8 = vpack.c.bf16 %v329_v5, %v328_v4  ;;  %v331_v9 = vld [vmem:[%s1147_s26 + $0x18] sm:$0xff]  ;;  %s999_s6 = smov 126   ;;  %vm1000_vm0 = vmmov 0   ;;  %v1001_v10 = vmov 0.0  }
  0x3c   : > { %s1156_s10 = scalar_select %p285_p9, %s983_s18, 1  ;;  %763 = vmatprep.subr.bf16.mxu0 %v998_v7  ;;  %760 = vmatprep.mubr.msk.f32.mxu0 %vm1000_vm0, %v1001_v10  ;;  %v767_v11 = vpack.c.bf16 %v331_v9, %v330_v6  ;;  %v332_v12 = vld [vmem:[%s1147_s26 + $0x20] sm:$0xff]  ;;  %v333_v13 = vld [vmem:[%s1147_s26 + $0x28] sm:$0xff]  ;;  %v334_v17 = vld [vmem:[%s1147_s26 + $0x30] sm:$0xff]  ;;  %v1003_v58 = vmov 3   ;;  %v1004_v61 = vmov 2   ;;  %v421_v5 = vlaneseq }
  0x3d   : > { %765 = vmatpush3.bf16.msra.mxu0 %v764_v8  ;;  %v770_v16 = vpack.c.bf16 %v333_v13, %v332_v12  ;;  %v335_v18 = vld [vmem:[%s1147_s26 + $0x38] sm:$0xff]  ;;  %v336_v22 = vld [vmem:[%s1147_s26 + $0x40] sm:$0xff]  ;;  %v337_v23 = vld [vmem:[%s1147_s26 + $0x48] sm:$0xff]  ;;  %s1002_s9 = smov 127   ;;  %s558_s5 = scalar_lea.sflag [#allocation4], %s1143_s22 }
  0x3e   : > { %s703_s12 = sshll.u32 %s1156_s10, 3  ;;  %766 = vmatprep.subr.bf16.mxu0 %v998_v7  ;;  %v773_v21 = vpack.c.bf16 %v335_v18, %v334_v17  ;;  %v776_v24 = vpack.c.bf16 %v337_v23, %v336_v22  ;;  %v338_v25 = vld [vmem:[%s1147_s26 + $0x50] sm:$0xff]  ;;  %v339_v26 = vld [vmem:[%s1147_s26 + $0x58] sm:$0xff]  ;;  %v340_v28 = vld [vmem:[%s1147_s26 + $0x60] sm:$0xff]  ;;  %s705_s11 = sshll.u32 %s1156_s10, 2 }
  0x3f   : > { %s298_s14 = scalar_lea.vmem %s1258_s1, %s703_s12  ;;  %s291_s8 = scalar_lea.vmem %s1257_s0, %s703_s12  ;;  %v779_v27 = vpack.c.bf16 %v339_v26, %v338_v25  ;;  %v341_v29 = vld [vmem:[%s1147_s26 + $0x68] sm:$0xff]  ;;  %v342_v33 = vld [vmem:[%s1147_s26 + $0x70] sm:$0xff]  ;;  %v343_v34 = vld [vmem:[%s1147_s26 + $0x78] sm:$0xff] }
  0x40   : > { %v1163_v2 = vld [vmem:[%s298_s14] sm:$0xff]  ;;  %v782_v31 = vpack.c.bf16 %v341_v29, %v340_v28  ;;  %v785_v35 = vpack.c.bf16 %v343_v34, %v342_v33  ;;  %s302_s25 = scalar_lea.vmem %s1260_s3, %s705_s11  ;;  %s702_s26 = sshll.u32 %s1143_s22, 3 }
  0x41   : > { %v460_v3 = vmul.f32 0.5, %v1163_v2  ;;  %v303_v14 = vld [vmem:[%s291_s8] sm:$0xff]  ;;  %768 = vmatpush3.bf16.msra.mxu0 %v767_v11  ;;  %s707_s10 = sshll.u32 %s983_s18, 7  ;;  %s284_s12 = scalar_lea.vmem [#allocation5], %s702_s26 }
  0x42   : > { %v304_v15 = vand.u32 2147483647, %v303_v14  ;;  %769 = vmatprep.subr.bf16.mxu0 %v998_v7  ;;  %v311_v36 = vsub.f32 0.0, %v303_v14  ;;  %v314_v40 = vmax.f32 %v303_v14, 0.0  ;;  %vm317_vm1 = vcmp.ge.f32.partialorder %v303_v14, 0.0  ;;  %s572_s13 = sshll.u32 %s284_s12, 4  ;;  %s1210_s13 = int_to_ptr.vmem [resolvable:$true] %s572_s13 }
  0x43   : > { %462 = vrot.lane.b32.xlu0 %v460_v3, %s999_s6  ;;  %s1208_s6 = scalar_lea.hbm %s1261_s4, %s707_s10  ;;  %s909_s7 = scalar_lea.vmem %s1210_s13, 128 }
  0x44   : > { %v305_v19 = vsub.f32 0.0, %v304_v15  ;;  %v312_v42 = vmax.f32 %v311_v36, 0.0  ;;  %p910_p8 = scmp.ne.s32.totalorder %s1210_s13, %s909_s7  ;;  %p1269_p11 = scmp.ne.s32.totalorder %s1265_s28, 0 }
  0x45   : > { %771 = vmatpush3.bf16.msra.mxu0 %v770_v16  ;;  %s1005_s18 = smov [#allocation5]  }
  0x46   : > { %v306_v20 = vmul.f32 1.442695, %v305_v19  ;;  %772 = vmatprep.subr.bf16.mxu0 %v998_v7  ;;  %p911_p0 = pnand %p910_p8, %p1269_p11  ;;  %s913_s8 = sshll.u32 %s1005_s18, 4  ;;  %s914_s8 = int_to_ptr.vmem [resolvable:$false] %s913_s8 }
  0x47   : > { %p916_p13 = scmp.lt.s32.totalorder %s1210_s13, %s914_s8 }
  0x48   : > { %869 = vpow2.f32 %v306_v20  ;;  %p912_p6 = pneg %p911_p0 }
  0x49   : > { %774 = vmatpush3.bf16.msra.mxu0 %v773_v21 }
  0x4a   : > { %775 = vmatprep.subr.bf16.mxu0 %v998_v7 }
  0x4d   : > { %777 = vmatpush3.bf16.msra.mxu0 %v776_v24 }
  0x4e   : > { %778 = vmatprep.subr.bf16.mxu0 %v998_v7 }
  0x51   : > { %780 = vmatpush3.bf16.msra.mxu0 %v779_v27 }
  0x52   : > { %v870_v30 = vpop.eup %869  ;;  %781 = vmatprep.subr.bf16.mxu0 %v998_v7 }
  0x53   : > { %v308_v32 = vadd.f32 1.0, %v870_v30 }
  0x55   : > { %871 = vlog2.f32 %v308_v32  ;;  %783 = vmatpush3.bf16.msra.mxu0 %v782_v31 }
  0x56   : > { %873 = vrcp.f32 %v308_v32  ;;  %784 = vmatprep.subr.bf16.mxu0 %v998_v7  ;;  %v422_v7 = vshrl.u32 %v421_v5, 7 }
  0x58   : > { %v433_v9 = vsub.s32 1, %v422_v7  ;;  %v423_v11 = vsub.s32 0, %v422_v7 }
  0x59   : > { %786 = vmatpush3.bf16.msra.mxu0 %v785_v35 }
  0x5f   : > { %v872_v37 = vpop.eup %871 }
  0x60   : > { %v874_v38 = vpop.eup %873  ;;  %v310_v39 = vmul.f32 0.6931472, %v872_v37 }
  0x61   : > { %v318_v41 = vsub.f32 1.0, %v874_v38 }
  0x62   : > { %v315_v44 = vadd.f32 %v314_v40, %v310_v39  ;;  %v313_v47 = vadd.f32 %v312_v42, %v310_v39  ;;  %v455_v42 = vsub.s32 3, %v422_v7 }
  0x63   : > { %v319_v43 = vsel %vm317_vm1, %v874_v38, %v318_v41 }
  0x64   : > { %v320_v45 = vmul.f32 %v319_v43, %v319_v43  ;;  %v323_v46 = vsub.f32 1.0, %v319_v43 }
  0x66   : > { %v321_v48 = vmul.f32 0.75, %v320_v45  ;;  %v324_v49 = vmul.f32 %v323_v46, %v323_v46  ;;  %v444_v46 = vsub.s32 2, %v422_v7 }
  0x68   : > { %v322_v50 = vmul.f32 %v321_v48, %v315_v44  ;;  %v325_v51 = vmul.f32 0.25, %v324_v49 }
  0x6a   : > { %v326_v52 = vmul.f32 %v325_v51, %v313_v47 }
  0x6c   : > { %v327_v53 = vsub.f32 %v326_v52, %v322_v50 }
  0x6e   : > { %761 = vmatmul.mubr.f32.vlgmr.msra.gmra.mrb[0].mxu0 %v327_v53 }
  0xb5   : > { %v463_v54 = vpop.permute.xlu0 %462 }
  0xb6   : > { %v465_v55 = vsub.f32 %v1163_v2, %v463_v54  ;;  %v466_v56 = vadd.f32 %v463_v54, %v1163_v2 }
  0xb8   : > { %486 = vperm.xlu1 %860, %v466_v56   ;;  %v473_v57 = vsub.f32 %v466_v56, %v465_v55 }
  0xba   : > { %475 = vrot.lane.b32.xlu0 %v473_v57, %s1002_s9  ;;  %s915_s9 = scalar_lea.vmem %s914_s8, 256 }
  0xbb   : > { %p917_p2 = scmp.lt.s32.totalorder %s915_s9, %s909_s7 }
  0xbc   : > { %496 = vperm.xlu1 %860, %v465_v55  }
  0xbd   : > { %p918_p5 = por %p917_p2, %p916_p13 }
  0xbe   : > { %507 = vperm.xlu0 %861, %v466_v56  }
  0xbf   : > { %p919_p4 = pnand %p918_p5, %p912_p6 }
  0xc0   : > { %862 = vset.pattern.permute.xlu1 %v997_v1 }
  0xc1   : > { %516 = vperm.xlu1 %862, %v465_v55  }
  0xc2   : > { %864 = vset.pattern.permute.xlu0 %v996_v0 }
  0xc3   : > { %418 = vperm.xlu0 %864, %v1163_v2  }
  0xc5   : > { %863 = vset.pattern.permute.xlu1 %v996_v0 }
  0xc7   : > { %867 = vset.pattern.permute.xlu0 %v1003_v58 }
  0xc8   : > { %450 = vperm.xlu0 %867, %v1163_v2  }
  0xcc   : > { %868 = vset.pattern.permute.xlu0 %v996_v0  ;;  %v415_v0 = vld [vmem:[%s302_s25] sm:$0xf] }
  0xcd   : > { %v467_v4 = vmul.f32 0.5, %v415_v0  ;;  %v424_v41 = vrot.slane %v415_v0, %v423_v11  ;;  %v434_v43 = vrot.slane %v415_v0, %v433_v9  ;;  %v456_v49 = vrot.slane %v415_v0, %v455_v42 }
  0xce   : > { %v445_v52 = vrot.slane %v415_v0, %v444_v46 }
  0xcf   : > { %v469_v6 = vrot.slane %v467_v4, 2 }
  0xd1   : > { %v471_v8 = vsub.f32 %v415_v0, %v469_v6  ;;  %v472_v10 = vadd.f32 %v469_v6, %v415_v0 }
  0xd3   : > { %v479_v13 = vsub.f32 %v472_v10, %v471_v8  ;;  %v502_v14 = vrot.slane %v471_v8, %v423_v11  ;;  %v513_v15 = vrot.slane %v472_v10, %v433_v9  ;;  %v492_v17 = vrot.slane %v472_v10, %v423_v11 }
  0xd5   : > { %v481_v20 = vrot.slane %v479_v13, 1 }
  0xd7   : > { %v483_v29 = vmul.f32 %v481_v20, %v479_v13 }
  0xd9   : > { %v535_v34 = vrot.slane %v483_v29, %v423_v11 }
 0x12c   : > { %v476_v59 = vpop.permute.xlu0 %475 }
 0x12d   : > { %v478_v60 = vmul.f32 %v476_v59, %v473_v57 }
 0x12f   : > { %529 = vperm.xlu1 %863, %v478_v60  }
 0x133   : > { %865 = vset.pattern.permute.xlu1 %v997_v1 }
 0x134   : > { %428 = vperm.xlu1 %865, %v1163_v2  }
 0x137   : > { %v487_v3 = vpop.permute.xlu1 %486 }
 0x138   : > { %866 = vset.pattern.permute.xlu1 %v1004_v61  ;;  %v540_v25 = vmax.f32 %v487_v3, %v492_v17  ;;  %v493_v27 = vmin.f32 %v487_v3, %v492_v17 }
 0x139   : > { %439 = vperm.xlu1 %866, %v1163_v2   ;;  %v522_v2 = vrot.slane %v471_v8, %v433_v9 }
 0x13b   : > { %v497_v1 = vpop.permute.xlu1 %496 }
 0x13c   : > { %v541_v21 = vmin.f32 %v497_v1, %v502_v14  ;;  %v503_v23 = vmax.f32 %v497_v1, %v502_v14 }
 0x13d   : > { %v508_v16 = vpop.permute.xlu0 %507 }
 0x13e   : > { %v544_v22 = vmax.f32 %v508_v16, %v513_v15  ;;  %v514_v24 = vmin.f32 %v508_v16, %v513_v15  ;;  %v542_v30 = vsub.f32 %v540_v25, %v541_v21  ;;  %v504_v31 = vsub.f32 %v493_v27, %v503_v23 }
 0x140   : > { %v517_v12 = vpop.permute.xlu1 %516  ;;  %v543_v35 = vmax.f32 %v542_v30, 0.0  ;;  %v505_v36 = vmax.f32 %v504_v31, 0.0 }
 0x141   : > { %v1196_v62 = vpop.f32.mrb[0].mxu0  ;;  %v545_v18 = vmin.f32 %v517_v12, %v522_v2  ;;  %v523_v19 = vmax.f32 %v517_v12, %v522_v2 }
 0x142   : > { %v762_v63 = vpop.f32.mrb[1].mxu0  ;;  %v419_v44 = vpop.permute.xlu0 %418 }
 0x143   : > { %v546_v26 = vsub.f32 %v544_v22, %v545_v18  ;;  %v524_v28 = vsub.f32 %v514_v24, %v523_v19  ;;  %v425_v48 = vsub.f32 %v419_v44, %v424_v41 }
 0x145   : > { %v547_v32 = vmax.f32 %v546_v26, 0.0  ;;  %v525_v33 = vmax.f32 %v524_v28, 0.0  ;;  %v426_v54 = vand.u32 2147483647, %v425_v48 }
 0x147   : > { %v548_v37 = vmul.f32 %v547_v32, %v543_v35  ;;  %v526_v39 = vmul.f32 %v525_v33, %v505_v36  ;;  %v451_v51 = vpop.permute.xlu0 %450 }
 0x148   : > { %v457_v55 = vsub.f32 %v451_v51, %v456_v49 }
 0x149   : > { %875 = vrcp.f32 %v548_v37 }
 0x14a   : > { %v458_v61 = vand.u32 2147483647, %v457_v55 }
 0x153   : > { %v876_v63 = vpop.eup %875 }
 0x1ae   : > { %v530_v38 = vpop.permute.xlu1 %529 }
 0x1af   : > { %v536_v40 = vadd.f32 %v535_v34, %v530_v38 }
 0x1b1   : > { %v537_v45 = vsub.f32 %v536_v40, %v526_v39 }
 0x1b3   : > { %877 = vrcp.f32 %v537_v45  ;;  %v429_v47 = vpop.permute.xlu1 %428  ;;  %v549_v58 = vsub.f32 %v548_v37, %v537_v45 }
 0x1b4   : > { %v435_v50 = vsub.f32 %v429_v47, %v434_v43 }
 0x1b5   : > { %v551_v6 = vmul.f32 %v876_v63, %v549_v58 }
 0x1b6   : > { %v436_v53 = vand.u32 2147483647, %v435_v50 }
 0x1b8   : > { %v440_v56 = vpop.permute.xlu1 %439  ;;  %v437_v59 = vadd.f32 %v436_v53, %v426_v54 }
 0x1b9   : > { %v446_v57 = vsub.f32 %v440_v56, %v445_v52 }
 0x1bb   : > { %v447_v60 = vand.u32 2147483647, %v446_v57 }
 0x1bd   : > { %v878_v3 = vpop.eup %877  ;;  %v448_v4 = vadd.f32 %v447_v60, %v437_v59 }
 0x1be   : > { %v539_v5 = vmul.f32 %v878_v3, %v526_v39 }
 0x1bf   : > { %v459_v1 = vadd.f32 %v458_v61, %v448_v4 }
 0x1c0   : > { %v552_v0 = vsub.f32 %v539_v5, %v551_v6 }
 0x1c1   : > { %v554_v7 = vadd.f32 %v459_v1, %v1196_v62 }
 0x1c2   : > { %v553_v8 = vsub.f32 0.0, %v552_v0 }
 0x1c4   : > { %v555_v9 = vadd.f32 %v554_v7, %v553_v8 }
 0x1c6   : > { %556 = vst [vmem:[%s284_s12] sm:$0xff] %v555_v9 }
 0x1c7   : > { %922 = shalt.err (!%p919_p4)
}
 0x1c8   : > { %s923_s22 = scalar_lea.hbm %s1208_s6, 128  ;;  %s927_s24 = scalar_lea.hbm %s1261_s4, 256 }
 0x1c9   : > { %p924_p7 = scmp.ne.s32.totalorder %s1208_s6, %s923_s22  ;;  %p928_p1 = scmp.lt.u32.totalorder %s1208_s6, %s1261_s4 }
 0x1ca   : > { %p929_p3 = scmp.lt.u32.totalorder %s927_s24, %s923_s22  ;;  %p931_p8 = scmp.lt.u32.totalorder %s923_s22, %s1208_s6 }
 0x1cb   : > { %p925_p10 = pnand %p924_p7, %p1269_p11 }
 0x1cc   : > { %p930_p9 = por %p929_p3, %p928_p1 }
 0x1cd   : > { %p926_p12 = pneg %p925_p10 }
 0x1ce   : > { %p932_p0 = por %p931_p8, %p930_p9 }
 0x1d0   : > { %p933_p6 = pnand %p932_p0, %p926_p12 }
 0x1d2   : > { %936 = shalt.err (!%p933_p6)
}
 0x1d3   : > { %789 = dma.vmem_to_hbm [thread:$0]  (%p1269_p11), %s1210_s13, 128, %s1208_s6, %s558_s5  }
 0x1d4 PF: > { %s584_s10 = sand.u32 1, %s971_s15   ;;  %p1270_p13 = scmp.ne.s32.totalorder %s1266_s30, 0 }
 0x1d5   : > { %p1271_p2 = scmp.ge.s32.totalorder %s991_s20, 2  ;;  %s585_s12 = scalar_lea.sflag [#allocation4], %s584_s10 }
 0x1d7   : > { %p796_p5 = pnand %p1271_p2, %p1270_p13 }
 0x1d9   : > { %966 = dma.done.wait (!%p796_p5), %s585_s12, 128  }
 0x1da   : > { %968 = vsyncadd (!%p796_p5), %s585_s12, 4294967168  ;;  %s20_s20 = sadd.s32 1, %s991_s20   ;;  %s1272_s15 = smov %s975_s16 }
 0x1db   : > { %p17_p4 = scmp.ge.s32.totalorder %s20_s20, 4   ;;  %s1273_s16 = smov %s979_s17 }
 0x1dc   : > { %s1274_s17 = smov %s1087_s29  ;;  %s1275_s18 = smov %s987_s19 }
 0x1dd   : > { %s1276_s19 = smov %s1278_s23  ;;  %19 = sbr.rel (!%p17_p4) target bundleno = 6 (0x6), region = 90 }
 0x1e4   :  { %590 = vsyncpa [#allocation3], 1 }
 0x1e5   :  { %592 = vsyncpa [#allocation3 + $0x1], 1 }
 0x1e6   :  { %593 = vsyncpa [#allocation4], 1 }
 0x1e7   :  { %595 = vsyncpa [#allocation4 + $0x1], 1 }

</bundles_post_ra>
